<compile_context>
chip_gen: v5e
topology: v5e:2x2
jax: 0.10.0
libtpu: 0.0.40
codegen_flags: <defaults>
</compile_context>

<pallas_src>
import jax
import jax.numpy as jnp
from jax.experimental import pallas as pl
from jax.experimental.pallas import tpu as pltpu


def _linear_add_relu_kernel(x_ref, w_ref, b_ref, other_ref, o_ref):
    # x: (B, IN) VMEM, w: (1, IN) VMEM (lane-dense), b/other: (1, 1) SMEM,
    # o: (B, 1) VMEM.
    # VPU multiply + cross-lane (XLU) reduce instead of a degenerate
    # (1x100)x(100x1) MXU pass.
    acc = jnp.sum(x_ref[...] * w_ref[...], axis=-1, keepdims=True)  # (B, 1) f32
    bias = b_ref[0, 0] + other_ref[0, 0]  # single scalar-ALU add, SMEM operands
    o_ref[...] = jnp.maximum(acc + bias, 0.0).astype(o_ref.dtype)


def linear_add_relu_fused(x, w, b, other):
    """Recommended production path (review item #1): let XLA fuse the whole
    epilogue into the producer of x — no kernel boundary, no extra DMA."""
    return jnp.maximum(x @ w.T + b.reshape(1, -1) + other, 0.0)


def linear_add_relu(x, w, b, other):
    """Pallas version.  x: (B, IN); w: (OUT, IN) PyTorch layout with OUT == 1;
    b: (OUT,); other: (1, 1)."""
    B, IN = x.shape
    OUT = w.shape[0]
    assert OUT == 1, "kernel specialized for Linear(IN, 1) as in the spec"

    # Already f32 per the spec; no redundant casts (review item #7).
    b2 = b.reshape(1, 1)          # scalar -> SMEM
    other2 = other.reshape(1, 1)  # scalar -> SMEM

    cost = pl.CostEstimate(
        flops=2 * B * IN + 2 * B,     # multiply-reduce + bias add + relu
        transcendentals=0,
        bytes_accessed=(x.size + w.size + 2 + B * OUT) * 4,
    )

    # Tiny problem: full-array blocks, no grid.
    # TODO(synk): a standalone pallas_call at this size is pure launch overhead;
    # prefer `linear_add_relu_fused` (or fuse into x's producer) in production.
    # TODO(synk): if B ever grows: add a batch grid with (tb, IN) blocks
    # (tb a multiple of 8), mark that axis "parallel" in
    # pltpu.CompilerParams(dimension_semantics=...) so v7x's 2 TCs split it,
    # present the output lane-dense as (1, B), and (on v6e/v7x only) accept
    # bf16 activations with an f32 accumulator.  All no-ops at B == 1.
    return pl.pallas_call(
        _linear_add_relu_kernel,
        out_shape=jax.ShapeDtypeStruct((B, OUT), x.dtype),
        in_specs=[
            pl.BlockSpec((B, IN), lambda: (0, 0)),              # x   (VMEM)
            pl.BlockSpec((OUT, IN), lambda: (0, 0)),            # w   (VMEM, lane-dense)
            pl.BlockSpec(memory_space=pltpu.MemorySpace.SMEM),  # b   (SMEM scalar)
            pl.BlockSpec(memory_space=pltpu.MemorySpace.SMEM),  # other (SMEM scalar)
        ],
        out_specs=pl.BlockSpec((B, OUT), lambda: (0, 0)),
        cost_estimate=cost,
    )(x, w, b2, other2)


if __name__ == "__main__":
    key = jax.random.PRNGKey(0)
    k_x, k_other, k_w, k_b = jax.random.split(key, 4)

    IN_FEATURES, OUT_FEATURES, BATCH = 100, 1, 1

    # Inputs (match the PyTorch example shapes).
    x1 = jax.random.normal(k_x, (BATCH, IN_FEATURES), dtype=jnp.float32)
    other = jax.random.normal(k_other, (1, 1), dtype=jnp.float32)

    # Deterministic parameter init (uniform like PyTorch's default Linear init).
    bound = 1.0 / (IN_FEATURES ** 0.5)
    w = jax.random.uniform(k_w, (OUT_FEATURES, IN_FEATURES),
                           minval=-bound, maxval=bound, dtype=jnp.float32)
    b = jax.random.uniform(k_b, (OUT_FEATURES,),
                           minval=-bound, maxval=bound, dtype=jnp.float32)

    out = linear_add_relu(x1, w, b, other)
    jax.block_until_ready(out)

    # Sanity check vs the fused pure-JAX reference (the recommended prod path).
    ref = linear_add_relu_fused(x1, w, b, other)
    assert jnp.allclose(out, ref, atol=1e-5, rtol=1e-5), (out, ref)

    print("KERNEL_OK")
</pallas_src>

<mosaic_0001>
module attributes {stable_mosaic.version = 11 : i64} {
  func.func @_linear_add_relu_kernel(%arg0: memref<1x100xf32, #tpu.memory_space<vmem>>, %arg1: memref<1x100xf32, #tpu.memory_space<vmem>>, %arg2: memref<1x1xf32, #tpu.memory_space<smem>>, %arg3: memref<1x1xf32, #tpu.memory_space<smem>>, %arg4: memref<1x1xf32, #tpu.memory_space<vmem>>) attributes {dimension_semantics = [], scalar_prefetch = 0 : i64, scratch_operands = 0 : i64, tpu.core_type = #tpu.core_type<tc>} {
    %c0 = arith.constant 0 : index
    %c0_0 = arith.constant 0 : index
    %0 = vector.load %arg0[%c0, %c0_0] : memref<1x100xf32, #tpu.memory_space<vmem>>, vector<1x100xf32>
    %c0_1 = arith.constant 0 : index
    %c0_2 = arith.constant 0 : index
    %1 = vector.load %arg1[%c0_1, %c0_2] : memref<1x100xf32, #tpu.memory_space<vmem>>, vector<1x100xf32>
    %2 = arith.mulf %0, %1 : vector<1x100xf32>
    %cst = arith.constant dense<0.000000e+00> : vector<1xf32>
    %3 = vector.multi_reduction <add>, %2, %cst [1] : vector<1x100xf32> to vector<1xf32>
    %4 = vector.shape_cast %3 : vector<1xf32> to vector<1x1xf32>
    %c0_3 = arith.constant 0 : index
    %c0_4 = arith.constant 0 : index
    %5 = memref.load %arg2[%c0_3, %c0_4] : memref<1x1xf32, #tpu.memory_space<smem>>
    %c0_5 = arith.constant 0 : index
    %c0_6 = arith.constant 0 : index
    %6 = memref.load %arg3[%c0_5, %c0_6] : memref<1x1xf32, #tpu.memory_space<smem>>
    %7 = arith.addf %5, %6 : f32
    %8 = vector.broadcast %7 : f32 to vector<1x1xf32>
    %9 = arith.addf %4, %8 : vector<1x1xf32>
    %cst_7 = arith.constant 0.000000e+00 : f32
    %10 = vector.broadcast %cst_7 : f32 to vector<1x1xf32>
    %11 = arith.maximumf %9, %10 : vector<1x1xf32>
    %c0_8 = arith.constant 0 : index
    %c0_9 = arith.constant 0 : index
    %12 = vector.load %arg4[%c0_8, %c0_9] : memref<1x1xf32, #tpu.memory_space<vmem>>, vector<1x1xf32>
    tpu.vector_store %arg4[%c0_8, %c0_9], %11 {strides = array<i32>} : memref<1x1xf32, #tpu.memory_space<vmem>>, vector<1x1xf32>,
    return
  }
}

</mosaic_0001>

<bundles_post_ra>
// kernel: tpu_custom_call.1
= control target key start
LH: loop header
LB: loop body
LE: loop exit
PB: predicated region body
PF: predicated region fallthrough
CT: control target
= control target key end

     0   :  { %vm23_vm0 = vcmask 811008   ;;  %s119_s0 = inlined_call_operand.vmem [shape: f32[1,100], index: 0, kind: input, shape index: {}]   ;;  %s120_s1 = inlined_call_operand.vmem [shape: f32[1,100], index: 1, kind: input, shape index: {}]   ;;  %s121_s2 = inlined_call_operand.<no memory space> [shape: f32[1,1], index: 2, kind: input, shape index: {}]   ;;  %s122_s3 = inlined_call_operand.<no memory space> [shape: f32[1,1], index: 3, kind: input, shape index: {}]   ;;  %s123_s4 = inlined_call_operand.hbm [shape: f32[1,1], index: 4, kind: output, shape index: {}]  }
   0x1   :  { %v20_v0 = vld [vmem:[%s119_s0] sm:$0x1] }
   0x2   :  { %v21_v1 = vld [vmem:[%s120_s1] sm:$0x1] }
   0x3   :  { %v22_v2 = vmul.f32 %v21_v1, %v20_v0 }
   0x4   :  { %11 = vsyncpa [#allocation5], 0  ;;  %s29_s23 = sadd.f32 %s122_s3, %s121_s2  ;;  %s78_s24 = smov [#allocation4]   ;;  %vm33_vm1 = vcmask 0  }
   0x5   :  { %v24_v3 = vsel %vm23_vm0, %v22_v2, 0.0  ;;  %s40_s0 = sshll.u32 %s78_s24, 4  ;;  %s42_s1 = sshll.u32 %s123_s4, 4  ;;  %s41_s0 = int_to_ptr.vmem [resolvable:$true] %s40_s0  ;;  %s43_s1 = int_to_ptr.hbm [resolvable:$true] %s42_s1 }
   0x6   :  { %25 = vadd.xlane.f32.xlu0 %v24_v3  ;;  %v30_v4 = vstv %s29_s23 }
  0x79   :  { %v26_v5 = vpop.xlane.xlu0 %25 }
  0x7a   :  { %v31_v6 = vadd.f32 %v30_v4, %v26_v5 }
  0x7c   :  { %v32_v7 = vmax.f32 %v31_v6, 0.0 }
  0x7e   :  { %34 = vst.msk [vmem:[#allocation4] sm:$0x1] %vm33_vm1, %v32_v7 }
  0x7f   :  { %45 = dma.vmem_to_hbm [thread:$0]  %s41_s0, 16, %s43_s1, [#allocation5]  }
  0x80   :  { %76 = dma.done.wait [#allocation5], 16  }
  0x81   :  { %77 = vsyncadd [#allocation5], 4294967280 }
  0x82   :  { %50 = vsyncpa [#allocation5], 1 }

</bundles_post_ra>
